<compile_context>
chip_gen: v6e
topology: v6e:2x2x1
jax: 0.10.0
libtpu: 0.0.40
codegen_flags: <defaults>
</compile_context>

<pallas_src>
import numpy as np

import jax
import jax.numpy as jnp
from jax.experimental import pallas as pl
from jax.experimental.pallas import tpu as pltpu

# ------------------------- config (small, deterministic) ---------------------
C_IN = 4
C_OUT = 8
KSIZE = 3
H = W = 16
BATCH = 2
N_POS = 2   # number of positive batches (x_pos.shape[0])
N_NEG = 2   # number of negative batches (x_neg.shape[0])


# ------------------------------ Pallas kernel --------------------------------
def conv_relu_kernel(xp_ref, w_ref, b_ref, out_ref):
    # xp_ref : (Bt, H+2, (W+2)*C_IN)   padded NHWC input, (w, c) flattened
    # w_ref  : (KSIZE, (W+2)*C_IN, W*C_OUT)  banded (block-Toeplitz) weights
    # b_ref  : (1, W*C_OUT)
    # out_ref: (Bt*H, W*C_OUT)         lane-dense (last dim == 128)
    bt, hp, kdim = xp_ref.shape
    h = hp - (KSIZE - 1)
    ndim = out_ref.shape[1]

    acc = jnp.zeros((bt * h, ndim), jnp.float32)
    # In-kernel "im2col": the dw/c taps are folded into the banded weight, so
    # only KSIZE row-shifted matmuls are needed (all data stays in VMEM/vregs).
    for dh in range(KSIZE):
        tap = xp_ref[:, dh:dh + h, :].reshape(bt * h, kdim)
        acc = acc + jnp.dot(tap, w_ref[dh], preferred_element_type=jnp.float32)
    acc = acc + b_ref[...]
    out_ref[...] = jnp.maximum(acc, 0.0).astype(out_ref.dtype)


def _conv_relu_pallas(xp, wmat, bmat, h_out):
    """xp: (Btot, H+2, (W+2)*C_IN) f32, wmat: (K, Kdim, N) f32, bmat: (1, N) f32
    -> (Btot*H, N) f32 flattened NHWC output (row = b*H + h, col = w*C_OUT + co)."""
    btot, hp, kdim = xp.shape
    ndim = wmat.shape[2]
    # Small parallel grid over the fused batch: lets v7x split across both TCs
    # and pipelines tile i+1's input DMA under tile i's compute.
    num_tiles = 2 if (btot % 2 == 0 and btot >= 2) else 1
    bt = btot // num_tiles
    return pl.pallas_call(
        conv_relu_kernel,
        out_shape=jax.ShapeDtypeStruct((btot * h_out, ndim), jnp.float32),
        grid=(num_tiles,),
        in_specs=[
            pl.BlockSpec((bt, hp, kdim), lambda i: (i, 0, 0)),
            pl.BlockSpec((KSIZE, kdim, ndim), lambda i: (0, 0, 0)),
            pl.BlockSpec((1, ndim), lambda i: (0, 0)),
        ],
        out_specs=pl.BlockSpec((bt * h_out, ndim), lambda i: (i, 0)),
        compiler_params=pltpu.CompilerParams(
            dimension_semantics=("parallel",)),
    )(xp, wmat, bmat)


# ------------------------------ encoder wrapper -------------------------------
class EmbeddingNet:
    """Synthetic encoder: Conv2d(C_IN, C_OUT, 3, padding=1) + ReLU (NCHW API)."""

    def __init__(self, key):
        kw, kb = jax.random.split(key)
        fan_in = C_IN * KSIZE * KSIZE
        bound = 1.0 / np.sqrt(fan_in)
        # PyTorch Conv2d weight layout: (C_out, C_in, kh, kw)
        self.weight = jax.random.uniform(
            kw, (C_OUT, C_IN, KSIZE, KSIZE), jnp.float32, -bound, bound)
        self.bias = jax.random.uniform(kb, (C_OUT,), jnp.float32, -bound, bound)

        # Banded (block-Toeplitz) matmul weight, built once at init:
        #   wmat[dh, (w+dw)*C_IN + c, w*C_OUT + co] = weight[co, c, dh, dw]
        # so the conv over the padded width becomes a plain (Kdim x 128) matmul
        # and the kernel only shifts over dh.  N = W*C_OUT = 128 (lane dense),
        # Kdim = (W+2)*C_IN = 72 (multiple of the 8-sublane tile).
        w_hwio = np.asarray(jnp.transpose(self.weight, (2, 3, 1, 0)))  # (kh,kw,ci,co)
        wm = np.zeros((KSIZE, (W + 2) * C_IN, W * C_OUT), np.float32)
        for dh in range(KSIZE):
            for w in range(W):
                for dw in range(KSIZE):
                    wi = w + dw
                    wm[dh, wi * C_IN:(wi + 1) * C_IN,
                       w * C_OUT:(w + 1) * C_OUT] = w_hwio[dh, dw]
        self.wmat = jnp.asarray(wm)                    # (3, 72, 128)
        self.bmat = jnp.tile(self.bias, W)[None, :]    # (1, 128), col = w*C_OUT+co

    def __call__(self, x_nchw):
        B, C, Hh, Ww = x_nchw.shape
        assert C == C_IN and Hh == H and Ww == W
        # NCHW -> NHWC, flatten (w, c) onto lanes, SAME-pad H and W by 1.
        x = jnp.transpose(x_nchw, (0, 2, 3, 1)).reshape(B, H, W * C_IN)
        xp = jnp.pad(x, ((0, 0), (1, 1), (C_IN, C_IN)))   # (B, H+2, (W+2)*C_IN)
        out2d = _conv_relu_pallas(xp, self.wmat, self.bmat, H)  # (B*H, 128)
        out = out2d.reshape(B, H, W, C_OUT)
        return jnp.transpose(out, (0, 3, 1, 2))            # NCHW, like nn.Conv2d


# ------------------------------ ContrastiveNet --------------------------------
class ContrastiveNet:
    """JAX/Pallas port of ContrastiveNet: applies encoder to anchor/pos/neg."""

    def __init__(self, embedding_net):
        self.embedding_net = embedding_net
        self.latent_representation = None
        self.training = True

    def forward(self, x_anchor, x_pos=None, x_neg=None):
        if self.training:
            assert x_pos is not None, \
                '[ContrastiveNet] No positive sample(s) given for training.'
            assert x_neg is not None, \
                '[ContrastiveNet] No negative sample(s) given for training.'
            B = x_anchor.shape[0]
            P, Bp = x_pos.shape[0], x_pos.shape[1]
            Ng, Bn = x_neg.shape[0], x_neg.shape[1]
            # Fuse anchor + all positive + all negative batches into one encoder
            # call (single Pallas launch); results are split afterwards.  The
            # encoder is per-image, so numerics are identical to separate calls.
            x_all = jnp.concatenate([
                x_anchor,
                x_pos.reshape((P * Bp,) + x_pos.shape[2:]),
                x_neg.reshape((Ng * Bn,) + x_neg.shape[2:]),
            ], axis=0)
            out_all = self.embedding_net(x_all)           # (B+P*Bp+Ng*Bn, C_OUT, H, W)
            output_anchor = out_all[:B]
            self.latent_representation = output_anchor
            out_pos = out_all[B:B + P * Bp].reshape(
                (P, Bp) + output_anchor.shape[1:])
            out_neg = out_all[B + P * Bp:].reshape(
                (Ng, Bn) + output_anchor.shape[1:])
            return (output_anchor, out_pos, out_neg)
        else:
            output_anchor = self.embedding_net(x_anchor)
            self.latent_representation = output_anchor
            return output_anchor

    def get_embedding(self, x):
        return self.embedding_net(x)

    # TODO(synk): get_encoder() clones the torch module via state_dict; no kernel
    # equivalent — omitted.


# ------------------------------ reference check ------------------------------
def _conv_relu_reference(x_nchw, weight, bias):
    out = jax.lax.conv_general_dilated(
        x_nchw, weight, window_strides=(1, 1), padding="SAME",
        dimension_numbers=("NCHW", "OIHW", "NCHW"))
    return jnp.maximum(out + bias[None, :, None, None], 0.0)


if __name__ == "__main__":
    key = jax.random.PRNGKey(0)
    k_net, k_a, k_p, k_n = jax.random.split(key, 4)

    net = ContrastiveNet(EmbeddingNet(k_net))

    x_anchor = jax.random.normal(k_a, (BATCH, C_IN, H, W), jnp.float32)
    x_pos = jax.random.normal(k_p, (N_POS, BATCH, C_IN, H, W), jnp.float32)
    x_neg = jax.random.normal(k_n, (N_NEG, BATCH, C_IN, H, W), jnp.float32)

    out_anchor, out_pos, out_neg = net.forward(x_anchor, x_pos, x_neg)
    jax.block_until_ready((out_anchor, out_pos, out_neg))

    assert out_anchor.shape == (BATCH, C_OUT, H, W)
    assert out_pos.shape == (N_POS, BATCH, C_OUT, H, W)
    assert out_neg.shape == (N_NEG, BATCH, C_OUT, H, W)

    # correctness vs pure-JAX reference encoder (anchor + fused pos/neg splits)
    w, b = net.embedding_net.weight, net.embedding_net.bias
    ref_anchor = _conv_relu_reference(x_anchor, w, b)
    assert jnp.allclose(out_anchor, ref_anchor, atol=1e-4, rtol=1e-4)

    ref_pos = _conv_relu_reference(
        x_pos.reshape((-1, C_IN, H, W)), w, b).reshape(out_pos.shape)
    assert jnp.allclose(out_pos, ref_pos, atol=1e-4, rtol=1e-4)

    ref_neg = _conv_relu_reference(
        x_neg.reshape((-1, C_IN, H, W)), w, b).reshape(out_neg.shape)
    assert jnp.allclose(out_neg, ref_neg, atol=1e-4, rtol=1e-4)

    print("KERNEL_OK")
</pallas_src>

<mosaic_0001>
module attributes {stable_mosaic.version = 11 : i64} {
  func.func @conv_relu_kernel(%arg0: i32, %arg1: memref<5x18x72xf32, #tpu.memory_space<vmem>>, %arg2: memref<3x72x128xf32, #tpu.memory_space<vmem>>, %arg3: memref<1x128xf32, #tpu.memory_space<vmem>>, %arg4: memref<80x128xf32, #tpu.memory_space<vmem>>) attributes {dimension_semantics = [#tpu.dimension_semantics<parallel>], iteration_bounds = array<i64: 2>, scalar_prefetch = 0 : i64, scratch_operands = 0 : i64, tpu.core_type = #tpu.core_type<tc>, window_params = [{transform_indices = @transform_0, window_bounds = array<i64: 5, 18, 72>}, {pipeline_mode = #tpu.pipeline_mode<synchronous>, transform_indices = @transform_1, window_bounds = array<i64: 3, 72, 128>}, {pipeline_mode = #tpu.pipeline_mode<synchronous>, transform_indices = @transform_2, window_bounds = array<i64: 1, 128>}, {transform_indices = @transform_3, window_bounds = array<i64: 80, 128>}]} {
    %cst = arith.constant 0.000000e+00 : f32
    %0 = vector.broadcast %cst : f32 to vector<80x128xf32>
    %c0 = arith.constant 0 : index
    %c0_0 = arith.constant 0 : index
    %c0_1 = arith.constant 0 : index
    %1 = vector.load %arg1[%c0, %c0_0, %c0_1] : memref<5x18x72xf32, #tpu.memory_space<vmem>>, vector<5x16x72xf32>
    %2 = vector.shape_cast %1 : vector<5x16x72xf32> to vector<80x72xf32>
    %c0_2 = arith.constant 0 : index
    %c0_3 = arith.constant 0 : index
    %c0_4 = arith.constant 0 : index
    %3 = vector.load %arg2[%c0_2, %c0_3, %c0_4] : memref<3x72x128xf32, #tpu.memory_space<vmem>>, vector<1x72x128xf32>
    %4 = vector.shape_cast %3 : vector<1x72x128xf32> to vector<72x128xf32>
    %cst_5 = arith.constant dense<0.000000e+00> : vector<80x128xf32>
    %5 = tpu.matmul %2, %4, %cst_5 {dimension_numbers = #tpu.dot_dimension_numbers<[1], [0], [0], [1], [0, 0, 1, 1], [], []>} : vector<80x72xf32>, vector<72x128xf32>, vector<80x128xf32> -> vector<80x128xf32>
    %6 = arith.addf %0, %5 : vector<80x128xf32>
    %c0_6 = arith.constant 0 : index
    %c1 = arith.constant 1 : index
    %c0_7 = arith.constant 0 : index
    %7 = vector.load %arg1[%c0_6, %c1, %c0_7] : memref<5x18x72xf32, #tpu.memory_space<vmem>>, vector<5x16x72xf32>
    %8 = vector.shape_cast %7 : vector<5x16x72xf32> to vector<80x72xf32>
    %c1_8 = arith.constant 1 : index
    %c0_9 = arith.constant 0 : index
    %c0_10 = arith.constant 0 : index
    %9 = vector.load %arg2[%c1_8, %c0_9, %c0_10] : memref<3x72x128xf32, #tpu.memory_space<vmem>>, vector<1x72x128xf32>
    %10 = vector.shape_cast %9 : vector<1x72x128xf32> to vector<72x128xf32>
    %cst_11 = arith.constant dense<0.000000e+00> : vector<80x128xf32>
    %11 = tpu.matmul %8, %10, %cst_11 {dimension_numbers = #tpu.dot_dimension_numbers<[1], [0], [0], [1], [0, 0, 1, 1], [], []>} : vector<80x72xf32>, vector<72x128xf32>, vector<80x128xf32> -> vector<80x128xf32>
    %12 = arith.addf %6, %11 : vector<80x128xf32>
    %c0_12 = arith.constant 0 : index
    %c2 = arith.constant 2 : index
    %c0_13 = arith.constant 0 : index
    %13 = vector.load %arg1[%c0_12, %c2, %c0_13] : memref<5x18x72xf32, #tpu.memory_space<vmem>>, vector<5x16x72xf32>
    %14 = vector.shape_cast %13 : vector<5x16x72xf32> to vector<80x72xf32>
    %c2_14 = arith.constant 2 : index
    %c0_15 = arith.constant 0 : index
    %c0_16 = arith.constant 0 : index
    %15 = vector.load %arg2[%c2_14, %c0_15, %c0_16] : memref<3x72x128xf32, #tpu.memory_space<vmem>>, vector<1x72x128xf32>
    %16 = vector.shape_cast %15 : vector<1x72x128xf32> to vector<72x128xf32>
    %cst_17 = arith.constant dense<0.000000e+00> : vector<80x128xf32>
    %17 = tpu.matmul %14, %16, %cst_17 {dimension_numbers = #tpu.dot_dimension_numbers<[1], [0], [0], [1], [0, 0, 1, 1], [], []>} : vector<80x72xf32>, vector<72x128xf32>, vector<80x128xf32> -> vector<80x128xf32>
    %18 = arith.addf %12, %17 : vector<80x128xf32>
    %c0_18 = arith.constant 0 : index
    %c0_19 = arith.constant 0 : index
    %19 = vector.load %arg3[%c0_18, %c0_19] : memref<1x128xf32, #tpu.memory_space<vmem>>, vector<1x128xf32>
    %20 = vector.broadcast %19 : vector<1x128xf32> to vector<80x128xf32>
    %21 = arith.addf %18, %20 : vector<80x128xf32>
    %cst_20 = arith.constant 0.000000e+00 : f32
    %22 = vector.broadcast %cst_20 : f32 to vector<80x128xf32>
    %23 = arith.maximumf %21, %22 : vector<80x128xf32>
    %c0_21 = arith.constant 0 : index
    %c0_22 = arith.constant 0 : index
    %24 = vector.load %arg4[%c0_21, %c0_22] : memref<80x128xf32, #tpu.memory_space<vmem>>, vector<80x128xf32>
    tpu.vector_store %arg4[%c0_21, %c0_22], %23 {strides = array<i32>} : memref<80x128xf32, #tpu.memory_space<vmem>>, vector<80x128xf32>,
    return
  }
  func.func @transform_0(%arg0: i32) -> (i32, i32, i32) {
    %c0_i32 = arith.constant 0 : i32
    %c0_i32_0 = arith.constant 0 : i32
    %c0_i32_1 = arith.constant 0 : i32
    return %arg0, %c0_i32, %c0_i32_0 : i32, i32, i32
  }
  func.func @transform_1(%arg0: i32) -> (i32, i32, i32) {
    %c0_i32 = arith.constant 0 : i32
    %c0_i32_0 = arith.constant 0 : i32
    %c0_i32_1 = arith.constant 0 : i32
    %c0_i32_2 = arith.constant 0 : i32
    return %c0_i32, %c0_i32_0, %c0_i32_1 : i32, i32, i32
  }
  func.func @transform_2(%arg0: i32) -> (i32, i32) {
    %c0_i32 = arith.constant 0 : i32
    %c0_i32_0 = arith.constant 0 : i32
    %c0_i32_1 = arith.constant 0 : i32
    return %c0_i32, %c0_i32_0 : i32, i32
  }
  func.func @transform_3(%arg0: i32) -> (i32, i32) {
    %c0_i32 = arith.constant 0 : i32
    %c0_i32_0 = arith.constant 0 : i32
    return %arg0, %c0_i32 : i32, i32
  }
}

</mosaic_0001>

<bundles_post_ra>
// kernel: tpu_custom_call.1
= control target key start
LH: loop header
LB: loop body
LE: loop exit
PB: predicated region body
PF: predicated region fallthrough
CT: control target
= control target key end

     0   :  { %8 = vsyncpa [#allocation3], 0  ;;  %s1541_s0 = inlined_call_operand.hbm [shape: f32[10,18,72], index: 0, kind: input, shape index: {}]   ;;  %s1542_s1 = inlined_call_operand.hbm [shape: f32[3,72,128], index: 1, kind: input, shape index: {}]   ;;  %s1543_s2 = inlined_call_operand.vmem [shape: f32[1,128], index: 2, kind: input, shape index: {}]   ;;  %s1544_s3 = inlined_call_operand.hbm [shape: f32[160,128], index: 3, kind: output, shape index: {}]  }
   0x1   :  { %10 = vsyncpa [#allocation3 + $0x1], 0 }
   0x2   :  { %11 = vsyncpa [#allocation6], 0 }
   0x3   :  { %12 = vsyncpa [#allocation4], 0 }
   0x4   :  { %14 = vsyncpa [#allocation4 + $0x1], 0  ;;  %s1279_s12 = smov 0   ;;  %s1281_s13 = smov 0  }
   0x5   :  { %s1283_s14 = smov 0   ;;  %s1285_s15 = smov 0  }
   0x6 LB: > { %s1300_s16 = sadd.s32 4294967295, %s1250_s15   ;;  %s846_s17 = sadd.s32 4294967294, %s1250_s15   ;;  %s1250_s15 = sphi %s1285_s15, %s1566_s15   ;;  %s1246_s14 = sphi %s1283_s14, %s1565_s14   ;;  %s1242_s13 = sphi %s1281_s13, %s1564_s13   ;;  %s1238_s12 = sphi %s1279_s12, %s1563_s12  }
   0x7   : > { %p40_p0 = scmp.ne.s32.totalorder %s1242_s13, %s1238_s12  ;;  %p1545_p1 = scmp.eq.s32.totalorder %s1300_s16, 0 }
   0x8   : > { %p112_p3 = scmp.eq.s32.totalorder %s846_s17, 1  ;;  %p847_p5 = scmp.ge.s32.totalorder %s1250_s15, 1 }
   0x9   : > { %p1309_p4 = por %p1545_p1, %p40_p0  ;;  %p119_p7 = scmp.lt.s32.totalorder %s1250_s15, 3 }
   0xa   : > { %p1314_p6 = por %p112_p3, %p40_p0  ;;  %s1252_s21 = smov [#allocation5]  }
   0xb   : > { %s1549_s18 = scalar_select %p1309_p4, 1, 0 }
   0xc   : > { %s1550_s19 = scalar_select %p1314_p6, 1, 0 }
   0xd   : > { %p1319_p8 = pnand %p847_p5, %p119_p7  ;;  %s131_s22 = sshll.u32 %s1252_s21, 4  ;;  %s132_s22 = int_to_ptr.vmem [resolvable:$true] %s131_s22 }
   0xe   : > { %s1333_s24 = sadd.s32 1, %s1250_s15   ;;  %s1139_s26 = scalar_lea.vmem %s132_s22, 3456 }
   0xf   : > { %s1551_s20 = scalar_select %p1319_p8, 1, 0 }
  0x10   : > { %p1074_p9 = pneg %p1319_p8  ;;  %s24_s25 = ssub.s32 %s1250_s15, %s1333_s24 }
  0x11   : > { %p1140_p13 = scmp.ne.s32.totalorder %s132_s22, %s1139_s26  ;;  %p1147_p5 = scmp.lt.s32.totalorder %s132_s22, %s132_s22 }
  0x12   : > { %p1328_p11 = pnand %p1074_p9, %p1545_p1  ;;  %p1148_p7 = scmp.lt.s32.totalorder %s1139_s26, %s1139_s26 }
  0x14   : > { %p1130_p12 = pneg %p1328_p11  ;;  %p1149_p2 = por %p1148_p7, %p1147_p5 }
  0x16   : > { %p1142_p0 = pnand %p1140_p13, %p1130_p12 }
  0x18   : > { %p1143_p3 = pneg %p1142_p0 }
  0x1a   : > { %p1150_p10 = pnand %p1149_p2, %p1143_p3 }
  0x1c   : > { %1153 = shalt.err (!%p1150_p10)
}
  0x1d   : > { %s1253_s27 = smov 128   ;;  %s1254_s28 = smov 8  }
  0x1e   : > { %1077 = dma.hbm_to_vmem [thread:$0]  (!%p1328_p11), %s1542_s1, 3456, %s132_s22, [#allocation6], %s1253_s27, %s1253_s27, %s1254_s28  }
  0x1f   : > { %p25_p2 = scmp.eq.s32.totalorder %s24_s25, 0  ;;  %s27_s4 = sadd.s32 1, %s1246_s14 }
  0x20   : > { %p34_p9 = scmp.ne.s32.totalorder %s1246_s14, %s1242_s13  ;;  %p35_p10 = scmp.eq.s32.totalorder %s1250_s15, 0 }
  0x21   : > { %s1352_s5 = scalar_select %p25_p2, %s1246_s14, %s27_s4  }
  0x22   : > { %p36_p12 = por %p35_p10, %p34_p9  ;;  %p1553_p13 = scmp.eq.s32.totalorder %s1300_s16, 1 }
  0x23   : > { %p1087_p3 = scmp.lt.s32.totalorder %s1250_s15, 2  ;;  %s148_s7 = sand.u32 1, %s1246_s14  }
  0x24   : > { %p1356_p0 = por %p1553_p13, %p34_p9  ;;  %s1062_s8 = smul.u32 120, %s148_s7 }
  0x25   : > { %s1088_s9 = smul.u32 1920, %s1250_s15  ;;  %p1363_p5 = pnand %p1087_p3, %p36_p12 }
  0x26   : > { %s1554_s6 = scalar_select %p1356_p0, 1, 0 }
  0x27   : > { %s1370_s21 = scalar_lea.hbm %s1541_s0, %s1088_s9  ;;  %s152_s22 = scalar_lea.vmem [#allocation2], %s1062_s8 }
  0x28   : > { %s160_s23 = sshll.u32 %s152_s22, 4  ;;  %s1374_s25 = scalar_lea.sflag [#allocation3], %s148_s7  ;;  %s1372_s23 = int_to_ptr.vmem [resolvable:$true] %s160_s23 }
  0x29   : > { %s1154_s26 = scalar_lea.hbm %s1370_s21, 1920  ;;  %p1156_p7 = pneg %p1363_p5 }
  0x2a   : > { %p1155_p11 = scmp.ne.s32.totalorder %s1370_s21, %s1154_s26  ;;  %s1159_s4 = scalar_lea.hbm %s1541_s0, 3840 }
  0x2b   : > { %p1160_p10 = scmp.lt.s32.totalorder %s1370_s21, %s1541_s0  ;;  %p1161_p12 = scmp.lt.s32.totalorder %s1159_s4, %s1154_s26 }
  0x2c   : > { %p1157_p2 = pnand %p1156_p7, %p1155_p11 }
  0x2d   : > { %p1162_p13 = por %p1161_p12, %p1160_p10 }
  0x2e   : > { %p1158_p9 = pneg %p1157_p2 }
  0x30   : > { %p1163_p3 = pnand %p1162_p13, %p1158_p9 }
  0x32   : > { %1166 = shalt.err (!%p1163_p3)
}
  0x33   : > { %s1167_s7 = scalar_lea.vmem %s1372_s23, 1920  ;;  %s1255_s8 = smov [#allocation2]  }
  0x34   : > { %p1168_p1 = scmp.ne.s32.totalorder %s1372_s23, %s1167_s7  ;;  %s1172_s17 = sshll.u32 %s1255_s8, 4  ;;  %s1173_s17 = int_to_ptr.vmem [resolvable:$false] %s1172_s17 }
  0x35   : > { %s1174_s22 = scalar_lea.vmem %s1173_s17, 3840  ;;  %p1175_p2 = scmp.lt.s32.totalorder %s1372_s23, %s1173_s17 }
  0x36   : > { %p1170_p6 = pnand %p1168_p1, %p1156_p7  ;;  %p1176_p0 = scmp.lt.s32.totalorder %s1174_s22, %s1167_s7 }
  0x38   : > { %p1171_p11 = pneg %p1170_p6  ;;  %p1177_p4 = por %p1176_p0, %p1175_p2 }
  0x3a   : > { %p1178_p8 = pnand %p1177_p4, %p1171_p11 }
  0x3c   : > { %1181 = shalt.err (!%p1178_p8)
}
  0x3d   : > { %1081 = dma.hbm_to_vmem [thread:$0]  (!%p1363_p5), %s1370_s21, 1920, %s1372_s23, %s1374_s25, %s1253_s27, %s1253_s27, %s1254_s28  }
  0x3e   : > { %p1556_p1 = scmp.ne.s32.totalorder %s1551_s20, 0 }
  0x3f   : > { %s1401_s26 = sand.u32 (!%p1556_p1), 1, %s1242_s13   ;;  %p1557_p4 = scmp.ne.s32.totalorder (!%p1556_p1), %s1549_s18, 0 }
  0x40   : > { %172 = sbr.rel (%p1556_p1) target bundleno = 344 (0x158), region = 32  ;;  %s175_s30 = scalar_lea.sflag (!%p1556_p1), [#allocation3], %s1401_s26 }
  0x41   : > { %s1064_s29 = smul.u32 (!%p1556_p1), 120, %s1401_s26 }
  0x43   : > { %s1405_s4 = scalar_lea.vmem (!%p1556_p1), [#allocation2], %s1064_s29 }
  0x45   : > { %1225 = dma.done.wait (%p1557_p4), %s175_s30, 1920  }
  0x46   : > { %1227 = vsyncadd (%p1557_p4), %s175_s30, 4294965376  ;;  %p1558_p6 = scmp.eq.s32.totalorder %s1300_s16, 0 }
  0x48   : > { %1229 = dma.done.wait (%p1558_p6), [#allocation6], 3456   ;;  %p1559_p8 = pmov %p1558_p6 }
  0x49   : > { %v245_v0 = vld [vmem:[#allocation5 + $0x88] sm:$0xff]  ;;  %v225_v1 = vld [vmem:[#allocation5 + $0x40] sm:$0xff]  ;;  %v224_v3 = vld [vmem:[#allocation5 + $0x38] sm:$0xff]  ;;  %vm246_vm0 = vcmask 588800   ;;  %s1065_s18 = smul.u32 80, %s1401_s26  ;;  %p1560_p5 = scmp.ne.s32.totalorder %s1554_s6, 0 }
  0x4a   : > { %1231 = vsyncadd (%p1559_p8), [#allocation6], 4294963840  ;;  %v244_v2 = vld [vmem:[#allocation5 + $0x80] sm:$0xff]  ;;  %945 = vmatprep.subr.mxu0 %v245_v0  ;;  %978 = vmatprep.subr.mxu1 %v225_v1  ;;  %v243_v4 = vld [vmem:[#allocation5 + $0x78] sm:$0xff]  ;;  %s887_s10 = smul.u32 1280, %s1300_s16  ;;  %s750_s16 = scalar_lea.sflag [#allocation4], %s1401_s26 }
  0x4b   : > { %946 = vmatpush3.msra.mxu0 %v245_v0  ;;  %979 = vmatpush3.msra.mxu1 %v225_v1  ;;  %v223_v5 = vld [vmem:[#allocation5 + $0x30] sm:$0xff]  ;;  %v222_v7 = vld [vmem:[#allocation5 + $0x28] sm:$0xff]  ;;  %v221_v9 = vld [vmem:[#allocation5 + $0x20] sm:$0xff]  ;;  %s1479_s28 = scalar_lea.vmem [#allocation7], %s1065_s18  ;;  %s1256_s7 = smov [#allocation7]  }
  0x4c   : > { %947 = vmatprep.subr.mxu0 %v244_v2  ;;  %980 = vmatprep.subr.mxu1 %v224_v3  ;;  %v242_v6 = vld [vmem:[#allocation5 + $0x70] sm:$0xff]  ;;  %v241_v8 = vld [vmem:[#allocation5 + $0x68] sm:$0xff]  ;;  %v240_v10 = vld [vmem:[#allocation5 + $0x60] sm:$0xff]  ;;  %s763_s21 = sshll.u32 %s1479_s28, 4  ;;  %s1494_s9 = scalar_lea.hbm %s1544_s3, %s887_s10  ;;  %s1496_s21 = int_to_ptr.vmem [resolvable:$true] %s763_s21 }
  0x4d   : > { %948 = vmatpush3.msra.mxu0 %v244_v2  ;;  %981 = vmatpush3.msra.mxu1 %v224_v3  ;;  %v220_v11 = vld [vmem:[#allocation5 + $0x18] sm:$0xff]  ;;  %v219_v13 = vld [vmem:[#allocation5 + $0x10] sm:$0xff]  ;;  %v218_v15 = vld [vmem:[#allocation5 + $0x8] sm:$0xff]  ;;  %s1182_s11 = scalar_lea.vmem %s1496_s21, 1280  ;;  %s1186_s8 = sshll.u32 %s1256_s7, 4  ;;  %s1187_s8 = int_to_ptr.vmem [resolvable:$false] %s1186_s8 }
  0x4e   : > { %949 = vmatprep.subr.mxu0 %v243_v4  ;;  %982 = vmatprep.subr.mxu1 %v223_v5  ;;  %v239_v12 = vld [vmem:[#allocation5 + $0x58] sm:$0xff]  ;;  %v238_v14 = vld [vmem:[#allocation5 + $0x50] sm:$0xff]  ;;  %v237_v16 = vld [vmem:[#allocation5 + $0x48] sm:$0xff]  ;;  %p1183_p0 = scmp.ne.s32.totalorder %s1496_s21, %s1182_s11  ;;  %s1188_s17 = scalar_lea.vmem %s1187_s8, 2560 }
  0x4f   : > { %950 = vmatpush3.msra.mxu0 %v243_v4  ;;  %983 = vmatpush3.msra.mxu1 %v223_v5  ;;  %v217_v17 = vld [vmem:[#allocation5] sm:$0xff]  ;;  %v226_v18 = vld [vmem:[%s1405_s4 + $0x1] sm:$0xff]  ;;  %p1189_p10 = scmp.lt.s32.totalorder %s1496_s21, %s1187_s8  ;;  %p1190_p12 = scmp.lt.s32.totalorder %s1188_s17, %s1182_s11 }
  0x50   : > { %951 = vmatprep.subr.mxu0 %v242_v6  ;;  %984 = vmatprep.subr.mxu1 %v222_v7  ;;  %v207_v19 = vld [vmem:[%s1405_s4] sm:$0xff]  ;;  %v227_v20 = vld [vmem:[%s1405_s4 + $0x9] sm:$0xff]  ;;  %v209_v24 = vld [vmem:[%s1405_s4 + $0x18] sm:$0xff]  ;;  %p1184_p7 = pnand %p1183_p0, %p1560_p5 }
  0x51   : > { %952 = vmatpush3.msra.mxu0 %v242_v6  ;;  %985 = vmatpush3.msra.mxu1 %v222_v7  ;;  %v208_v21 = vld [vmem:[%s1405_s4 + $0x8] sm:$0xff]  ;;  %v228_v23 = vld [vmem:[%s1405_s4 + $0x19] sm:$0xff]  ;;  %v230_v29 = vld [vmem:[%s1405_s4 + $0x31] sm:$0xff]  ;;  %p1191_p13 = por %p1190_p12, %p1189_p10 }
  0x52   : > { %953 = vmatprep.subr.mxu0 %v241_v8  ;;  %986 = vmatprep.subr.mxu1 %v221_v9  ;;  %v556_v22 = vld [vmem:[#allocation5 + $0xd0] sm:$0xff]  ;;  %v555_v25 = vld [vmem:[#allocation5 + $0xc8] sm:$0xff]  ;;  %v554_v28 = vld [vmem:[#allocation5 + $0xc0] sm:$0xff]  ;;  %p1185_p9 = pneg %p1184_p7 }
  0x53   : > { %954 = vmatpush3.msra.mxu0 %v241_v8  ;;  %987 = vmatpush3.msra.mxu1 %v221_v9  ;;  %v229_v26 = vld [vmem:[%s1405_s4 + $0x21] sm:$0xff]  ;;  %v211_v30 = vld [vmem:[%s1405_s4 + $0x30] sm:$0xff]  ;;  %v231_v32 = vld [vmem:[%s1405_s4 + $0x39] sm:$0xff] }
  0x54   : > { %955 = vmatprep.subr.mxu0 %v240_v10  ;;  %988 = vmatprep.subr.mxu1 %v220_v11  ;;  %v210_v27 = vld [vmem:[%s1405_s4 + $0x20] sm:$0xff]  ;;  %v553_v31 = vld [vmem:[#allocation5 + $0xb8] sm:$0xff]  ;;  %v212_v33 = vld [vmem:[%s1405_s4 + $0x38] sm:$0xff]  ;;  %p1192_p3 = pnand %p1191_p13, %p1185_p9 }
  0x55   : > { %956 = vmatpush3.msra.mxu0 %v240_v10  ;;  %989 = vmatpush3.msra.mxu1 %v220_v11  ;;  %v552_v34 = vld [vmem:[#allocation5 + $0xb0] sm:$0xff]  ;;  %v233_v37 = vld [vmem:[%s1405_s4 + $0x51] sm:$0xff] }
  0x56   : > { %957 = vmatprep.subr.mxu0 %v239_v12  ;;  %990 = vmatprep.subr.mxu1 %v219_v13  ;;  %v232_v35 = vld [vmem:[%s1405_s4 + $0x49] sm:$0xff]  ;;  %v551_v39 = vld [vmem:[#allocation5 + $0xa8] sm:$0xff] }
  0x57   : > { %958 = vmatpush3.msra.mxu0 %v239_v12  ;;  %991 = vmatpush3.msra.mxu1 %v219_v13  ;;  %v213_v36 = vld [vmem:[%s1405_s4 + $0x48] sm:$0xff]  ;;  %v214_v38 = vld [vmem:[%s1405_s4 + $0x50] sm:$0xff]  ;;  %v215_v42 = vld [vmem:[%s1405_s4 + $0x60] sm:$0xff] }
  0x58   : > { %959 = vmatprep.subr.mxu0 %v238_v14  ;;  %992 = vmatprep.subr.mxu1 %v218_v15  ;;  %v550_v40 = vld [vmem:[#allocation5 + $0xa0] sm:$0xff]  ;;  %v234_v41 = vld [vmem:[%s1405_s4 + $0x61] sm:$0xff] }
  0x59   : > { %960 = vmatpush3.msra.mxu0 %v238_v14  ;;  %993 = vmatpush3.msra.mxu1 %v218_v15  ;;  %v235_v43 = vld [vmem:[%s1405_s4 + $0x69] sm:$0xff]  ;;  %v544_v50 = vld [vmem:[%s1405_s4 + $0x52] sm:$0xff]  ;;  %v539_v51 = vld [vmem:[%s1405_s4 + $0x1a] sm:$0xff] }
  0x5a   : > { %961 = vmatprep.subr.mxu0 %v237_v16  ;;  %994 = vmatprep.subr.mxu1 %v217_v17  ;;  %v216_v44 = vld [vmem:[%s1405_s4 + $0x68] sm:$0xff]  ;;  %v541_v55 = vld [vmem:[%s1405_s4 + $0x32] sm:$0xff]  ;;  %v542_v56 = vld [vmem:[%s1405_s4 + $0x3a] sm:$0xff] }
  0x5b   : > { %962 = vmatpush3.msra.mxu0 %v237_v16  ;;  %963 = vmatprep.mubr.msk.f32.mxu0 %vm246_vm0, %v226_v18  ;;  %v549_v45 = vld [vmem:[#allocation5 + $0x98] sm:$0xff]  ;;  %v548_v46 = vld [vmem:[#allocation5 + $0x90] sm:$0xff] }
  0x5c   : > { %995 = vmatpush3.msra.mxu1 %v217_v17  ;;  %996 = vmatprep.mubr.msk.f32.mxu1 %vm246_vm0, %v207_v19  ;;  %v537_v47 = vld [vmem:[%s1405_s4 + $0x2] sm:$0xff]  ;;  %v543_v48 = vld [vmem:[%s1405_s4 + $0x4a] sm:$0xff] }
  0x5d   : > { %964 = vmatmul.mubr.msk.f32.vlgmr.msra.gmra.mxu0 %vm246_vm0, %v227_v20  ;;  %997 = vmatmul.mubr.msk.f32.vlgmr.msra.gmra.mxu1 %vm246_vm0, %v208_v21  ;;  %v538_v49 = vld [vmem:[%s1405_s4 + $0xa] sm:$0xff]  ;;  %v545_v52 = vld [vmem:[%s1405_s4 + $0x62] sm:$0xff] }
  0x5e   : > { %1011 = vmatprep.subr.mxu0 %v556_v22  ;;  %1044 = vmatprep.subr.mxu1 %v556_v22  ;;  %v540_v53 = vld [vmem:[%s1405_s4 + $0x22] sm:$0xff]  ;;  %v546_v54 = vld [vmem:[%s1405_s4 + $0x6a] sm:$0xff] }
  0x5f   : > { %1012 = vmatpush3.msra.mxu0 %v556_v22  ;;  %966 = vmatprep.mubr.msk.f32.mxu0 %vm246_vm0, %v228_v23  ;;  %v883_v16 = vld [vmem:[%s1543_s2] ss:$0 sm:$0xff] }
  0x60   : > { %999 = vmatprep.mubr.msk.f32.mxu1 %vm246_vm0, %v209_v24  ;;  %1053 = vmatpush3.msra.mxu1 %v556_v22 }
  0x61   : > { %1013 = vmatprep.subr.mxu0 %v555_v25  ;;  %967 = vmatmul.mubr.msk.f32.gmra.mxu0 %vm246_vm0, %v229_v26 }
  0x62   : > { %1000 = vmatmul.mubr.msk.f32.gmra.mxu1 %vm246_vm0, %v210_v27  ;;  %1045 = vmatprep.subr.mxu1 %v555_v25 }
  0x63   : > { %1014 = vmatpush3.msra.mxu0 %v555_v25  ;;  %1054 = vmatpush3.msra.mxu1 %v555_v25 }
  0x64   : > { %1015 = vmatprep.subr.mxu0 %v554_v28  ;;  %1046 = vmatprep.subr.mxu1 %v554_v28 }
  0x65   : > { %1016 = vmatpush3.msra.mxu0 %v554_v28  ;;  %969 = vmatprep.mubr.msk.f32.mxu0 %vm246_vm0, %v230_v29 }
  0x66   : > { %1002 = vmatprep.mubr.msk.f32.mxu1 %vm246_vm0, %v211_v30  ;;  %1055 = vmatpush3.msra.mxu1 %v554_v28 }
  0x67   : > { %1017 = vmatprep.subr.mxu0 %v553_v31  ;;  %970 = vmatmul.mubr.msk.f32.gmra.mxu0 %vm246_vm0, %v231_v32 }
  0x68   : > { %1003 = vmatmul.mubr.msk.f32.gmra.mxu1 %vm246_vm0, %v212_v33  ;;  %1047 = vmatprep.subr.mxu1 %v553_v31 }
  0x69   : > { %1018 = vmatpush3.msra.mxu0 %v553_v31  ;;  %1056 = vmatpush3.msra.mxu1 %v553_v31 }
  0x6a   : > { %1019 = vmatprep.subr.mxu0 %v552_v34  ;;  %1048 = vmatprep.subr.mxu1 %v552_v34 }
  0x6b   : > { %1020 = vmatpush3.msra.mxu0 %v552_v34  ;;  %972 = vmatprep.mubr.msk.f32.mxu0 %vm246_vm0, %v232_v35 }
  0x6c   : > { %1005 = vmatprep.mubr.msk.f32.mxu1 %vm246_vm0, %v213_v36  ;;  %1057 = vmatpush3.msra.mxu1 %v552_v34 }
  0x6d   : > { %973 = vmatmul.mubr.msk.f32.gmra.mxu0 %vm246_vm0, %v233_v37  ;;  %1006 = vmatmul.mubr.msk.f32.gmra.mxu1 %vm246_vm0, %v214_v38 }
  0x6e   : > { %1021 = vmatprep.subr.mxu0 %v551_v39  ;;  %1049 = vmatprep.subr.mxu1 %v551_v39 }
  0x6f   : > { %1022 = vmatpush3.msra.mxu0 %v551_v39  ;;  %1058 = vmatpush3.msra.mxu1 %v551_v39 }
  0x70   : > { %1023 = vmatprep.subr.mxu0 %v550_v40  ;;  %1050 = vmatprep.subr.mxu1 %v550_v40 }
  0x71   : > { %975 = vmatprep.mubr.msk.f32.mxu0 %vm246_vm0, %v234_v41  ;;  %1008 = vmatprep.mubr.msk.f32.mxu1 %vm246_vm0, %v215_v42 }
  0x72   : > { %1024 = vmatpush3.msra.mxu0 %v550_v40  ;;  %1059 = vmatpush3.msra.mxu1 %v550_v40 }
  0x73   : > { %976 = vmatmul.mubr.msk.f32.gmra.mxu0 %vm246_vm0, %v235_v43  ;;  %1009 = vmatmul.mubr.msk.f32.gmra.mxu1 %vm246_vm0, %v216_v44 }
  0x74   : > { %1025 = vmatprep.subr.mxu0 %v549_v45  ;;  %1051 = vmatprep.subr.mxu1 %v549_v45 }
  0x75   : > { %1026 = vmatpush3.msra.mxu0 %v549_v45  ;;  %1060 = vmatpush3.msra.mxu1 %v549_v45 }
  0x76   : > { %1027 = vmatprep.subr.mxu0 %v548_v46  ;;  %1052 = vmatprep.subr.mxu1 %v548_v46 }
  0x77   : > { %1028 = vmatpush3.msra.mxu0 %v548_v46  ;;  %1061 = vmatpush3.msra.mxu1 %v548_v46 }
  0x78   : > { %1029 = vmatprep.mubr.msk.f32.mxu0 %vm246_vm0, %v537_v47  ;;  %1038 = vmatprep.mubr.msk.f32.mxu1 %vm246_vm0, %v543_v48 }
  0x79   : > { %1030 = vmatmul.mubr.msk.f32.vlgmr.msra.gmra.mxu0 %vm246_vm0, %v538_v49  ;;  %1039 = vmatmul.mubr.msk.f32.vlgmr.msra.gmra.mxu1 %vm246_vm0, %v544_v50 }
  0x7a   : > { %1032 = vmatprep.mubr.msk.f32.mxu0 %vm246_vm0, %v539_v51  ;;  %1041 = vmatprep.mubr.msk.f32.mxu1 %vm246_vm0, %v545_v52 }
  0x7d   : > { %1033 = vmatmul.mubr.msk.f32.gmra.mxu0 %vm246_vm0, %v540_v53  ;;  %1042 = vmatmul.mubr.msk.f32.gmra.mxu1 %vm246_vm0, %v546_v54 }
  0x7e   : > { %1035 = vmatprep.mubr.msk.f32.mxu0 %vm246_vm0, %v541_v55 }
  0x81   : > { %1036 = vmatmul.mubr.msk.f32.gmra.mxu0 %vm246_vm0, %v542_v56 }
 0x11d   : > { %v965_v57 = vpop.f32.mrf.mxu0  ;;  %v998_v58 = vpop.f32.mrf.mxu1 }
 0x11e   : > { %v494_v13 = vadd.f32 %v998_v58, %v965_v57 }
 0x11f   : > { %v343_v59 = vpop.f32.mrf.mxu0  ;;  %v488_v60 = vpop.f32.mrf.mxu1 }
 0x120   : > { %v489_v18 = vadd.f32 %v488_v60, %v343_v59 }
 0x121   : > { %v968_v61 = vpop.f32.mrf.mxu0 }
 0x122   : > { %v1001_v62 = vpop.f32.mrf.mxu1 }
 0x123   : > { %v353_v63 = vpop.f32.mrf.mxu0  ;;  %v504_v28 = vadd.f32 %v1001_v62, %v968_v61 }
 0x124   : > { %v498_v0 = vpop.f32.mrf.mxu1 }
 0x125   : > { %v499_v29 = vadd.f32 %v498_v0, %v353_v63 }
 0x127   : > { %v971_v1 = vpop.f32.mrf.mxu0 }
 0x128   : > { %v1004_v2 = vpop.f32.mrf.mxu1 }
 0x129   : > { %v363_v3 = vpop.f32.mrf.mxu0  ;;  %v514_v38 = vadd.f32 %v1004_v2, %v971_v1 }
 0x12a   : > { %v508_v4 = vpop.f32.mrf.mxu1 }
 0x12b   : > { %v509_v50 = vadd.f32 %v508_v4, %v363_v3 }
 0x12d   : > { %v974_v5 = vpop.f32.mrf.mxu0  ;;  %v1007_v6 = vpop.f32.mrf.mxu1 }
 0x12e   : > { %v524_v14 = vadd.f32 %v1007_v6, %v974_v5 }
 0x12f   : > { %v373_v7 = vpop.f32.mrf.mxu0  ;;  %v518_v8 = vpop.f32.mrf.mxu1 }
 0x130   : > { %v519_v19 = vadd.f32 %v518_v8, %v373_v7 }
 0x133   : > { %v977_v9 = vpop.f32.mrf.mxu0  ;;  %v1010_v10 = vpop.f32.mrf.mxu1 }
 0x134   : > { %v534_v30 = vadd.f32 %v1010_v10, %v977_v9 }
 0x135   : > { %v383_v11 = vpop.f32.mrf.mxu0  ;;  %v528_v12 = vpop.f32.mrf.mxu1 }
 0x136   : > { %v529_v31 = vadd.f32 %v528_v12, %v383_v11 }
 0x139   : > { %v1031_v15 = vpop.f32.mrf.mxu0  ;;  %v1040_v17 = vpop.f32.mrf.mxu1 }
 0x13a   : > { %v703_v20 = vadd.f32 %v1031_v15, %v494_v13  ;;  %v709_v21 = vadd.f32 %v1040_v17, %v524_v14 }
 0x13b   : > { %v653_v22 = vpop.f32.mrf.mxu0  ;;  %v683_v23 = vpop.f32.mrf.mxu1 }
 0x13c   : > { %v720_v24 = vadd.f32 %v883_v16, %v703_v20  ;;  %v726_v25 = vadd.f32 %v883_v16, %v709_v21  ;;  %v702_v26 = vadd.f32 %v653_v22, %v489_v18  ;;  %v708_v27 = vadd.f32 %v683_v23, %v519_v19 }
 0x13d   : > { %v1034_v32 = vpop.f32.mrf.mxu0  ;;  %v1043_v33 = vpop.f32.mrf.mxu1 }
 0x13e   : > { %v730_v34 = vmax.f32 %v720_v24, 0.0  ;;  %v736_v35 = vmax.f32 %v726_v25, 0.0  ;;  %v719_v36 = vadd.f32 %v883_v16, %v702_v26  ;;  %v725_v37 = vadd.f32 %v883_v16, %v708_v27 }
 0x13f   : > { %v705_v39 = vadd.f32 %v1034_v32, %v504_v28  ;;  %v711_v40 = vadd.f32 %v1043_v33, %v534_v30  ;;  %v663_v41 = vpop.f32.mrf.mxu0  ;;  %v693_v42 = vpop.f32.mrf.mxu1 }
 0x140   : > { %740 = vst [vmem:[%s1479_s28 + $0x8] sm:$0xff] %v730_v34  ;;  %746 = vst [vmem:[%s1479_s28 + $0x38] sm:$0xff] %v736_v35  ;;  %v729_v43 = vmax.f32 %v719_v36, 0.0  ;;  %v735_v44 = vmax.f32 %v725_v37, 0.0  ;;  %v704_v45 = vadd.f32 %v663_v41, %v499_v29  ;;  %v710_v46 = vadd.f32 %v693_v42, %v529_v31 }
 0x141   : > { %v722_v47 = vadd.f32 %v883_v16, %v705_v39  ;;  %v728_v48 = vadd.f32 %v883_v16, %v711_v40  ;;  %v1037_v49 = vpop.f32.mrf.mxu0 }
 0x142   : > { %739 = vst [vmem:[%s1479_s28] sm:$0xff] %v729_v43  ;;  %745 = vst [vmem:[%s1479_s28 + $0x30] sm:$0xff] %v735_v44  ;;  %v721_v51 = vadd.f32 %v883_v16, %v704_v45  ;;  %v727_v52 = vadd.f32 %v883_v16, %v710_v46  ;;  %v707_v53 = vadd.f32 %v1037_v49, %v514_v38 }
 0x143   : > { %v732_v54 = vmax.f32 %v722_v47, 0.0  ;;  %v738_v55 = vmax.f32 %v728_v48, 0.0  ;;  %v673_v56 = vpop.f32.mrf.mxu0 }
 0x144   : > { %v731_v57 = vmax.f32 %v721_v51, 0.0  ;;  %v737_v58 = vmax.f32 %v727_v52, 0.0  ;;  %v724_v59 = vadd.f32 %v883_v16, %v707_v53  ;;  %v706_v60 = vadd.f32 %v673_v56, %v509_v50 }
 0x145   : > { %742 = vst [vmem:[%s1479_s28 + $0x18] sm:$0xff] %v732_v54  ;;  %748 = vst [vmem:[%s1479_s28 + $0x48] sm:$0xff] %v738_v55 }
 0x146   : > { %741 = vst [vmem:[%s1479_s28 + $0x10] sm:$0xff] %v731_v57  ;;  %747 = vst [vmem:[%s1479_s28 + $0x40] sm:$0xff] %v737_v58  ;;  %v734_v61 = vmax.f32 %v724_v59, 0.0  ;;  %v723_v62 = vadd.f32 %v883_v16, %v706_v60 }
 0x148   : > { %744 = vst [vmem:[%s1479_s28 + $0x28] sm:$0xff] %v734_v61  ;;  %v733_v63 = vmax.f32 %v723_v62, 0.0 }
 0x14a   : > { %743 = vst [vmem:[%s1479_s28 + $0x20] sm:$0xff] %v733_v63 }
 0x14b   : > { %1195 = shalt.err (!%p1192_p3)
}
 0x14c   : > { %s1196_s22 = scalar_lea.hbm %s1494_s9, 1280  ;;  %s1200_s4 = scalar_lea.hbm %s1544_s3, 2560 }
 0x14d   : > { %p1197_p11 = scmp.ne.s32.totalorder %s1494_s9, %s1196_s22  ;;  %p1201_p4 = scmp.lt.s32.totalorder %s1494_s9, %s1544_s3 }
 0x14e   : > { %p1202_p6 = scmp.lt.s32.totalorder %s1200_s4, %s1196_s22 }
 0x14f   : > { %p1198_p2 = pnand %p1197_p11, %p1560_p5 }
 0x150   : > { %p1203_p8 = por %p1202_p6, %p1201_p4 }
 0x151   : > { %p1199_p1 = pneg %p1198_p2 }
 0x153   : > { %p1204_p0 = pnand %p1203_p8, %p1199_p1 }
 0x155   : > { %1207 = shalt.err (!%p1204_p0)
}
 0x156   : > { %s1257_s27 = smov 128   ;;  %s1258_s28 = smov 8  }
 0x157   : > { %1072 = dma.vmem_to_hbm [thread:$0]  (%p1560_p5), %s1496_s21, 1280, %s1494_s9, %s750_s16, %s1257_s27, %s1257_s27, %s1258_s28  }
 0x158 PF: > { %s778_s10 = sand.u32 1, %s1238_s12   ;;  %p1561_p7 = scmp.ne.s32.totalorder %s1550_s19, 0 }
 0x159   : > { %p1562_p9 = scmp.ge.s32.totalorder %s1250_s15, 2  ;;  %s779_s23 = scalar_lea.sflag [#allocation4], %s778_s10 }
 0x15b   : > { %p1083_p10 = pnand %p1562_p9, %p1561_p7 }
 0x15d   : > { %p1084_p12 = pneg %p1083_p10 }
 0x15f   : > { %1233 = dma.done.wait (%p1084_p12), %s779_s23, 1280  }
 0x160   : > { %1235 = vsyncadd (%p1084_p12), %s779_s23, 4294966016  ;;  %p17_p13 = scmp.ge.s32.totalorder %s1333_s24, 4   ;;  %s1563_s12 = smov %s1242_s13 }
 0x161   : > { %s1564_s13 = smov %s1246_s14  ;;  %s1565_s14 = smov %s1352_s5 }
 0x162   : > { %s1566_s15 = smov %s1333_s24  ;;  %19 = sbr.rel (!%p17_p13) target bundleno = 6 (0x6), region = 83 }
 0x167   :  { %784 = vsyncpa [#allocation3], 1 }
 0x168   :  { %786 = vsyncpa [#allocation3 + $0x1], 1 }
 0x169   :  { %787 = vsyncpa [#allocation6], 1 }
 0x16a   :  { %788 = vsyncpa [#allocation4], 1 }
 0x16b   :  { %790 = vsyncpa [#allocation4 + $0x1], 1 }

</bundles_post_ra>
